<compile_context>
chip_gen: v5e
topology: v5e:2x2
jax: 0.10.0
libtpu: 0.0.40
codegen_flags: <defaults>
</compile_context>

<pallas_src>
import jax
import jax.numpy as jnp
import numpy as np
from jax.experimental import pallas as pl
from jax.experimental.pallas import tpu as pltpu


def _gap_kernel(x_ref, w_ref, b_ref, out_ref):
    """x_ref: [TB, S, H], w_ref: [1, H], b_ref: [1, 1], out_ref: [TB, H]."""
    x = x_ref[...]                                           # [TB, S, H] f32
    w = w_ref[...]                                           # [1, H]

    # attention logits: logits[b, s] = <x[b, s, :], w> + bias   (lane reduce)
    logits = jnp.sum(x * w, axis=-1) + b_ref[...]            # [TB, S]

    # softmax over the sequence axis (torch dim=1)
    m = jnp.max(logits, axis=-1, keepdims=True)              # [TB, 1]
    ex = jnp.exp(logits - m)                                 # [TB, S]
    denom = jnp.sum(ex, axis=-1, keepdims=True)              # [TB, 1]
    p = ex * pl.reciprocal(denom, approx=True)               # [TB, S]

    # weighted pooling over the sequence: out[b, h] = sum_s p[b, s] * x[b, s, h]
    out_ref[...] = jnp.sum(x * p[..., None], axis=1)         # [TB, H]


def global_attention_pool(x, w, b, *, tile_b=256):
    """x: [B, S, H] f32, w: [1, H] (torch Linear(H,1).weight), b: [1] -> [B, H]."""
    B, S, H = x.shape
    tile_b = min(tile_b, B)
    if B % tile_b != 0:          # small / odd batches: single block, grid=(1,)
        tile_b = B

    wt = w.reshape(1, H)
    b2 = b.reshape(1, 1)

    return pl.pallas_call(
        _gap_kernel,
        out_shape=jax.ShapeDtypeStruct((B, H), x.dtype),
        grid=(B // tile_b,),
        in_specs=[
            pl.BlockSpec((tile_b, S, H), lambda i: (i, 0, 0)),   # x, tiled over batch
            pl.BlockSpec((1, H), lambda i: (0, 0)),              # attention weight (resident)
            pl.BlockSpec((1, 1), lambda i: (0, 0)),              # attention bias (resident)
        ],
        out_specs=pl.BlockSpec((tile_b, H), lambda i: (i, 0)),
        compiler_params=pltpu.CompilerParams(
            dimension_semantics=("parallel",)),                  # shard batch on v7x's 2 TCs
    )(x, wt, b2)


def _reference(x, w, b):
    """Pure-JAX mirror of the PyTorch forward."""
    logits = jnp.einsum("bsh,oh->bso", x, w) + b             # [B, S, 1]
    weights = jax.nn.softmax(logits, axis=1)
    return jnp.sum(x * weights, axis=1)                      # [B, H]


if __name__ == "__main__":
    B, S, H = 16, 8, 32

    key = jax.random.PRNGKey(0)
    kx, kw, kb = jax.random.split(key, 3)
    x = jax.random.normal(kx, (B, S, H), jnp.float32)
    w = 0.1 * jax.random.normal(kw, (1, H), jnp.float32)     # Linear(H, 1).weight
    b = 0.1 * jax.random.normal(kb, (1,), jnp.float32)       # Linear(H, 1).bias

    out = global_attention_pool(x, w, b, tile_b=8)           # grid=(2,) over batch
    out = jax.block_until_ready(out)

    ref = jax.block_until_ready(_reference(x, w, b))
    assert out.shape == (B, H)
    # tolerance relaxed for the approx (EUP) reciprocal in the softmax denominator
    assert np.allclose(np.asarray(out), np.asarray(ref), atol=2e-3, rtol=2e-3)

    print("KERNEL_OK")
</pallas_src>

<mosaic_0001>
module attributes {stable_mosaic.version = 11 : i64} {
  func.func @_gap_kernel(%arg0: i32, %arg1: memref<8x8x32xf32, #tpu.memory_space<vmem>>, %arg2: memref<1x32xf32, #tpu.memory_space<vmem>>, %arg3: memref<1x1xf32, #tpu.memory_space<vmem>>, %arg4: memref<8x32xf32, #tpu.memory_space<vmem>>) attributes {dimension_semantics = [#tpu.dimension_semantics<parallel>], iteration_bounds = array<i64: 2>, scalar_prefetch = 0 : i64, scratch_operands = 0 : i64, tpu.core_type = #tpu.core_type<tc>, window_params = [{transform_indices = @transform_0, window_bounds = array<i64: 8, 8, 32>}, {pipeline_mode = #tpu.pipeline_mode<synchronous>, transform_indices = @transform_1, window_bounds = array<i64: 1, 32>}, {pipeline_mode = #tpu.pipeline_mode<synchronous>, transform_indices = @transform_2, window_bounds = array<i64: 1, 1>}, {transform_indices = @transform_3, window_bounds = array<i64: 8, 32>}]} {
    %c0 = arith.constant 0 : index
    %c0_0 = arith.constant 0 : index
    %c0_1 = arith.constant 0 : index
    %0 = vector.load %arg1[%c0, %c0_0, %c0_1] : memref<8x8x32xf32, #tpu.memory_space<vmem>>, vector<8x8x32xf32>
    %c0_2 = arith.constant 0 : index
    %c0_3 = arith.constant 0 : index
    %1 = vector.load %arg2[%c0_2, %c0_3] : memref<1x32xf32, #tpu.memory_space<vmem>>, vector<1x32xf32>
    %2 = vector.shape_cast %1 : vector<1x32xf32> to vector<1x1x32xf32>
    %3 = vector.broadcast %2 : vector<1x1x32xf32> to vector<8x8x32xf32>
    %4 = arith.mulf %0, %3 : vector<8x8x32xf32>
    %cst = arith.constant dense<0.000000e+00> : vector<8x8xf32>
    %5 = vector.multi_reduction <add>, %4, %cst [2] : vector<8x8x32xf32> to vector<8x8xf32>
    %c0_4 = arith.constant 0 : index
    %c0_5 = arith.constant 0 : index
    %6 = vector.load %arg3[%c0_4, %c0_5] : memref<1x1xf32, #tpu.memory_space<vmem>>, vector<1x1xf32>
    %7 = vector.broadcast %6 : vector<1x1xf32> to vector<8x8xf32>
    %8 = arith.addf %5, %7 : vector<8x8xf32>
    %cst_6 = arith.constant dense<0xFF800000> : vector<8xf32>
    %9 = vector.multi_reduction <maximumf>, %8, %cst_6 [1] : vector<8x8xf32> to vector<8xf32>
    %10 = vector.shape_cast %9 : vector<8xf32> to vector<8x1xf32>
    %11 = vector.broadcast %10 : vector<8x1xf32> to vector<8x8xf32>
    %12 = arith.subf %8, %11 : vector<8x8xf32>
    %13 = math.exp %12 : vector<8x8xf32>
    %cst_7 = arith.constant dense<0.000000e+00> : vector<8xf32>
    %14 = vector.multi_reduction <add>, %13, %cst_7 [1] : vector<8x8xf32> to vector<8xf32>
    %15 = vector.shape_cast %14 : vector<8xf32> to vector<8x1xf32>
    %16 = tpu.reciprocal %15 {approx = true} : vector<8x1xf32> -> vector<8x1xf32>
    %17 = vector.broadcast %16 : vector<8x1xf32> to vector<8x8xf32>
    %18 = arith.mulf %13, %17 : vector<8x8xf32>
    %19 = vector.shape_cast %18 : vector<8x8xf32> to vector<8x8x1xf32>
    %20 = vector.broadcast %19 : vector<8x8x1xf32> to vector<8x8x32xf32>
    %21 = arith.mulf %0, %20 : vector<8x8x32xf32>
    %cst_8 = arith.constant dense<0.000000e+00> : vector<8x32xf32>
    %22 = vector.multi_reduction <add>, %21, %cst_8 [1] : vector<8x8x32xf32> to vector<8x32xf32>
    %c0_9 = arith.constant 0 : index
    %c0_10 = arith.constant 0 : index
    %23 = vector.load %arg4[%c0_9, %c0_10] : memref<8x32xf32, #tpu.memory_space<vmem>>, vector<8x32xf32>
    tpu.vector_store %arg4[%c0_9, %c0_10], %22 {strides = array<i32>} : memref<8x32xf32, #tpu.memory_space<vmem>>, vector<8x32xf32>,
    return
  }
  func.func @transform_0(%arg0: i32) -> (i32, i32, i32) {
    %c0_i32 = arith.constant 0 : i32
    %c0_i32_0 = arith.constant 0 : i32
    %c0_i32_1 = arith.constant 0 : i32
    return %arg0, %c0_i32, %c0_i32_0 : i32, i32, i32
  }
  func.func @transform_1(%arg0: i32) -> (i32, i32) {
    %c0_i32 = arith.constant 0 : i32
    %c0_i32_0 = arith.constant 0 : i32
    %c0_i32_1 = arith.constant 0 : i32
    return %c0_i32, %c0_i32_0 : i32, i32
  }
  func.func @transform_2(%arg0: i32) -> (i32, i32) {
    %c0_i32 = arith.constant 0 : i32
    %c0_i32_0 = arith.constant 0 : i32
    %c0_i32_1 = arith.constant 0 : i32
    return %c0_i32, %c0_i32_0 : i32, i32
  }
  func.func @transform_3(%arg0: i32) -> (i32, i32) {
    %c0_i32 = arith.constant 0 : i32
    %c0_i32_0 = arith.constant 0 : i32
    return %arg0, %c0_i32 : i32, i32
  }
}

</mosaic_0001>

<bundles_post_ra>
// kernel: tpu_custom_call.1
= control target key start
LH: loop header
LB: loop body
LE: loop exit
PB: predicated region body
PF: predicated region fallthrough
CT: control target
= control target key end

     0   :  { %s1061_s0 = inlined_call_operand.hbm [shape: f32[16,8,32], index: 0, kind: input, shape index: {}]   ;;  %s1062_s1 = inlined_call_operand.vmem [shape: f32[1,32], index: 1, kind: input, shape index: {}]   ;;  %s1063_s2 = inlined_call_operand.<no memory space> [shape: f32[1,1], index: 2, kind: input, shape index: {}]   ;;  %s1064_s3 = inlined_call_operand.hbm [shape: f32[16,32], index: 3, kind: output, shape index: {}]  }
   0x1   :  { %v8_v0 = vstv %s1063_s2 }
   0x2   :  { %9 = vst [vmem:[#allocation2] sm:$0x1] %v8_v0 }
   0x3   :  { %10 = vsyncpa [#allocation4], 0 }
   0x4   :  { %12 = vsyncpa [#allocation4 + $0x1], 0 }
   0x5   :  { %13 = vsyncpa [#allocation5], 0 }
   0x6   :  { %15 = vsyncpa [#allocation5 + $0x1], 0  ;;  %s826_s14 = smov 0   ;;  %s828_s15 = smov 0  }
   0x7   :  { %s830_s16 = smov 0   ;;  %s832_s17 = smov 0  }
   0x8 LB: > { %s847_s2 = sadd.s32 4294967295, %s798_s17   ;;  %s616_s18 = sadd.s32 4294967294, %s798_s17   ;;  %s798_s17 = sphi %s832_s17, %s1074_s17   ;;  %s794_s16 = sphi %s830_s16, %s1073_s16   ;;  %s790_s15 = sphi %s828_s15, %s1072_s15   ;;  %s786_s14 = sphi %s826_s14, %s1071_s14  }
   0x9   : > { %s851_s19 = sadd.s32 1, %s798_s17   ;;  %s28_s20 = sadd.s32 1, %s794_s16 }
   0xa   : > { %s25_s21 = ssub.s32 %s798_s17, %s851_s19  ;;  %p35_p0 = scmp.ne.s32.totalorder %s794_s16, %s790_s15 }
   0xb   : > { %p26_p1 = scmp.eq.s32.totalorder %s25_s21, 0  ;;  %p36_p2 = scmp.eq.s32.totalorder %s798_s17, 0 }
   0xc   : > { %p41_p3 = scmp.ne.s32.totalorder %s790_s15, %s786_s14  ;;  %p42_p4 = scmp.eq.s32.totalorder %s847_s2, 0 }
   0xd   : > { %s863_s22 = scalar_select %p26_p1, %s794_s16, %s28_s20  }
   0xe   : > { %p865_p5 = por %p36_p2, %p35_p0  ;;  %p869_p6 = por %p42_p4, %p41_p3 }
   0xf   : > { %p107_p7 = scmp.eq.s32.totalorder %s847_s2, 1  ;;  %p113_p8 = scmp.eq.s32.totalorder %s616_s18, 1 }
  0x10   : > { %p642_p10 = scmp.lt.s32.totalorder %s798_s17, 2  ;;  %s139_s27 = sand.u32 1, %s794_s16  }
  0x11   : > { %p876_p11 = por %p107_p7, %p35_p0  ;;  %p880_p12 = por %p113_p8, %p41_p3 }
  0x12   : > { %s629_s28 = sshll.u32 %s798_s17, 6  ;;  %s619_s29 = sshll.u32 %s139_s27, 6 }
  0x13   : > { %s148_s5 = scalar_lea.hbm %s1061_s0, %s629_s28  ;;  %s143_s7 = scalar_lea.vmem [#allocation3], %s619_s29 }
  0x14   : > { %s149_s6 = sshll.u32 %s148_s5, 4  ;;  %s151_s8 = sshll.u32 %s143_s7, 4  ;;  %s150_s6 = int_to_ptr.hbm [resolvable:$true] %s149_s6  ;;  %s152_s8 = int_to_ptr.vmem [resolvable:$true] %s151_s8 }
  0x15   : > { %p891_p13 = pnand %p642_p10, %p865_p5  ;;  %p622_p0 = scmp.ge.s32.totalorder %s798_s17, 1 }
  0x16   : > { %p159_p1 = scmp.lt.s32.totalorder %s798_s17, 3  ;;  %s140_s10 = scalar_lea.sflag [#allocation4], %s139_s27 }
  0x17   : > { %s702_s11 = sshra.s32 %s150_s6, 4  ;;  %p706_p3 = pneg %p891_p13  ;;  %s703_s11 = int_to_ptr.hbm [resolvable:$true] %s702_s11 }
  0x18   : > { %s704_s12 = scalar_lea.hbm %s703_s11, 64  ;;  %s709_s20 = scalar_lea.hbm %s1061_s0, 128 }
  0x19   : > { %p705_p2 = scmp.ne.s32.totalorder %s703_s11, %s704_s12  ;;  %p710_p5 = scmp.lt.s32.totalorder %s703_s11, %s1061_s0 }
  0x1a   : > { %p711_p8 = scmp.lt.s32.totalorder %s709_s20, %s704_s12 }
  0x1b   : > { %p707_p4 = pnand %p706_p3, %p705_p2 }
  0x1c   : > { %p712_p10 = por %p711_p8, %p710_p5 }
  0x1d   : > { %p708_p7 = pneg %p707_p4 }
  0x1f   : > { %p713_p9 = pnand %p712_p10, %p708_p7 }
  0x21   : > { %716 = shalt.err (!%p713_p9)
}
  0x22   : > { %s800_s27 = smov 128   ;;  %s801_s28 = smov 8  }
  0x23   : > { %637 = dma.hbm_to_vmem [thread:$0]  (!%p891_p13), %s150_s6, 1024, %s152_s8, %s140_s10, %s800_s27, %s800_s27, %s801_s28  }
  0x24   : > { %p160_p2 = pnand %p622_p0, %p159_p1 }
  0x25   : > { %s912_s29 = sand.u32 (!%p160_p2), 1, %s790_s15  }
  0x26   : > { %163 = sbr.rel (%p160_p2) target bundleno = 759 (0x2f7), region = 32  ;;  %s623_s30 = sshll.u32 (!%p160_p2), %s912_s29, 6 }
  0x27   : > { %s166_s4 = scalar_lea.sflag (!%p160_p2), [#allocation4], %s912_s29  ;;  %s916_s5 = scalar_lea.vmem (!%p160_p2), [#allocation3], %s623_s30 }
  0x2b   : > { %777 = dma.done.wait (%p869_p6), %s166_s4, 1024  }
  0x2c   : > { %779 = vsyncadd (%p869_p6), %s166_s4, 4294966272  ;;  %v802_v1 = vmov 0   ;;  %v923_v2 = vld [vmem:[%s916_s5 + $0x10] sm:$0xff]  ;;  %v682_v3 = vld [vmem:[%s1062_s1] ss:$0 sm:$0xff]  ;;  %vm214_vm0 = vcmask 261120   ;;  %v262_v34 = vlaneseq }
  0x2d   : > { %679 = vset.pattern.permute.xlu1 %v802_v1  ;;  %681 = vset.pattern.permute.xlu2 %v802_v1  ;;  %v929_v4 = vld [vmem:[%s916_s5] sm:$0xff]  ;;  %v932_v5 = vld [vmem:[%s916_s5 + $0x18] sm:$0xff]  ;;  %v208_v6 = vmul.f32 %v682_v3, %v923_v2  ;;  %v938_v9 = vld [vmem:[%s916_s5 + $0x8] sm:$0xff]  ;;  %vm272_vm1 = vcmask 1041409   ;;  %vm274_vm2 = vcmask 1042434   ;;  %vm276_vm3 = vcmask 1043459  }
  0x2e   : > { %680 = vset.pattern.permute.xlu0 %v802_v1  ;;  %v206_v7 = vmul.f32 %v682_v3, %v929_v4  ;;  %v209_v8 = vmul.f32 %v682_v3, %v932_v5  ;;  %v944_v13 = vld [vmem:[%s916_s5 + $0x20] sm:$0xff]  ;;  %v207_v14 = vmul.f32 %v682_v3, %v938_v9  ;;  %v951_v18 = vld [vmem:[%s916_s5 + $0x28] sm:$0xff]  ;;  %v954_v19 = vld [vmem:[%s916_s5 + $0x30] sm:$0xff]  ;;  %v965_v35 = vand.u32 127, %v262_v34  ;;  %s624_s24 = sshll.u32 %s912_s29, 3  ;;  %s626_s8 = sshll.u32 %s847_s2, 3 }
  0x2f   : > { %v221_v10 = vsel %vm214_vm0, %v208_v6, 0.0  ;;  %v210_v15 = vmul.f32 %v682_v3, %v944_v13  ;;  %v211_v20 = vmul.f32 %v682_v3, %v951_v18  ;;  %v212_v21 = vmul.f32 %v682_v3, %v954_v19  ;;  %v961_v24 = vld [vmem:[%s916_s5 + $0x38] sm:$0xff]  ;;  %s541_s11 = scalar_lea.hbm %s1064_s3, %s626_s8  ;;  %s192_s2 = scalar_lea.vmem [#allocation6], %s624_s24 }
  0x30   : > { %v215_v11 = vsel %vm214_vm0, %v206_v7, 0.0  ;;  %v224_v12 = vsel %vm214_vm0, %v209_v8, 0.0  ;;  %222 = vadd.xlane.f32.xlu1 %v221_v10  ;;  %v218_v16 = vsel %vm214_vm0, %v207_v14, 0.0  ;;  %v213_v25 = vmul.f32 %v682_v3, %v961_v24  ;;  %v683_v27 = vld [vmem:[#allocation2] ss:$0 sm:$0xff]  ;;  %s543_s12 = sshll.u32 %s192_s2, 4  ;;  %s544_s12 = int_to_ptr.vmem [resolvable:$true] %s543_s12 }
  0x31   : > { %216 = vadd.xlane.f32.xlu0 %v215_v11  ;;  %225 = vadd.xlane.f32.xlu2 %v224_v12  ;;  %v227_v17 = vsel %vm214_vm0, %v210_v15, 0.0  ;;  %v230_v22 = vsel %vm214_vm0, %v211_v20, 0.0  ;;  %v233_v23 = vsel %vm214_vm0, %v212_v21, 0.0  ;;  %vm278_vm4 = vcmask 1044484   ;;  %s545_s13 = sshll.u32 %s541_s11, 4  ;;  %s531_s18 = scalar_lea.sflag [#allocation5], %s912_s29  ;;  %s546_s13 = int_to_ptr.hbm [resolvable:$true] %s545_s13 }
  0x32   : > { %v236_v26 = vsel %vm214_vm0, %v213_v25, 0.0  ;;  %vm280_vm5 = vcmask 1045509   ;;  %vm282_vm6 = vcmask 1046534   ;;  %vm284_vm7 = vcmask 1047559   ;;  %s746_s20 = sshra.s32 %s546_s13, 4  ;;  %s752_s28 = scalar_lea.hbm %s1064_s3, 16  ;;  %s747_s20 = int_to_ptr.hbm [resolvable:$true] %s746_s20 }
  0x33   : > { %vm287_vm8 = vcmask 64512   ;;  %s748_s21 = scalar_lea.hbm %s747_s20, 8  ;;  %p753_p0 = scmp.lt.s32.totalorder %s747_s20, %s1064_s3 }
  0x34   : > { %p749_p6 = scmp.ne.s32.totalorder %s747_s20, %s748_s21  ;;  %p754_p1 = scmp.lt.s32.totalorder %s752_s28, %s748_s21 }
  0x36   : > { %p750_p9 = pnand %p749_p6, %p876_p11  ;;  %p755_p3 = por %p754_p1, %p753_p0 }
  0x38   : > { %p751_p13 = pneg %p750_p9 }
  0x39   : > { %219 = vadd.xlane.f32.xlu0 %v218_v16  ;;  %228 = vadd.xlane.f32.xlu2 %v227_v17 }
  0x3a   : > { %p756_p4 = pnand %p755_p3, %p751_p13 }
  0x41   : > { %231 = vadd.xlane.f32.xlu0 %v230_v22  ;;  %234 = vadd.xlane.f32.xlu2 %v233_v23 }
  0x49   : > { %237 = vadd.xlane.f32.xlu0 %v236_v26  ;;  %243 = vperm.xlu1 %679, %v683_v27  }
  0xa3   : > { %v223_v32 = vpop.xlane.xlu1 %222 }
  0xa4   : > { %v217_v28 = vpop.xlane.xlu0 %216  ;;  %v226_v29 = vpop.xlane.xlu2 %225 }
  0xac   : > { %v220_v30 = vpop.xlane.xlu0 %219  ;;  %v229_v31 = vpop.xlane.xlu2 %228 }
  0xb4   : > { %v232_v33 = vpop.xlane.xlu0 %231  ;;  %v235_v37 = vpop.xlane.xlu2 %234 }
  0xbb   : > { %v244_v36 = vpop.permute.xlu1 %243 }
  0xbc   : > { %v246_v38 = vadd.f32 %v244_v36, %v217_v28  ;;  %v247_v39 = vadd.f32 %v244_v36, %v220_v30  ;;  %v248_v40 = vadd.f32 %v244_v36, %v223_v32  ;;  %v238_v41 = vpop.xlane.xlu0 %237  ;;  %v249_v42 = vadd.f32 %v244_v36, %v226_v29 }
  0xbd   : > { %v250_v43 = vadd.f32 %v244_v36, %v229_v31  ;;  %v251_v44 = vadd.f32 %v244_v36, %v232_v33  ;;  %v252_v48 = vadd.f32 %v244_v36, %v235_v37  ;;  %v253_v49 = vadd.f32 %v244_v36, %v238_v41 }
  0xbe   : > { %v264_v45 = vperm.slane %v246_v38, %v965_v35  ;;  %v265_v46 = vperm.slane %v247_v39, %v965_v35  ;;  %v266_v47 = vperm.slane %v248_v40, %v965_v35  ;;  %v267_v50 = vperm.slane %v249_v42, %v965_v35 }
  0xbf   : > { %v268_v52 = vperm.slane %v250_v43, %v965_v35  ;;  %v269_v54 = vperm.slane %v251_v44, %v965_v35  ;;  %v270_v56 = vperm.slane %v252_v48, %v965_v35  ;;  %v271_v58 = vperm.slane %v253_v49, %v965_v35 }
  0xc0   : > { %v273_v51 = vsel %vm272_vm1, %v265_v46, %v264_v45 }
  0xc1   : > { %v275_v53 = vsel %vm274_vm2, %v266_v47, %v273_v51 }
  0xc2   : > { %v277_v55 = vsel %vm276_vm3, %v267_v50, %v275_v53 }
  0xc3   : > { %v279_v57 = vsel %vm278_vm4, %v268_v52, %v277_v55 }
  0xc4   : > { %v281_v59 = vsel %vm280_vm5, %v269_v54, %v279_v57 }
  0xc5   : > { %v283_v60 = vsel %vm282_vm6, %v270_v56, %v281_v59 }
  0xc6   : > { %v285_v61 = vsel %vm284_vm7, %v271_v58, %v283_v60 }
  0xc7   : > { %v288_v62 = vsel %vm287_vm8, %v285_v61, -inf }
  0xc8   : > { %289 = vmax.xlane.f32.xlu2 %v288_v62 }
 0x13b   : > { %v290_v63 = vpop.xlane.xlu2 %289 }
 0x13c   : > { %v294_v0 = vperm.slane %v290_v63, 2  ;;  %v293_v1 = vperm.slane %v290_v63, 1  ;;  %v292_v3 = vperm.slane %v290_v63, 0  ;;  %v295_v10 = vperm.slane %v290_v63, 3 }
 0x13d   : > { %v297_v11 = vperm.slane %v290_v63, 5  ;;  %v296_v21 = vperm.slane %v290_v63, 4  ;;  %v299_v23 = vperm.slane %v290_v63, 7  ;;  %v298_v31 = vperm.slane %v290_v63, 6 }
 0x13e   : > { %v310_v6 = vsub.f32 %v248_v40, %v294_v0  ;;  %v309_v7 = vsub.f32 %v247_v39, %v293_v1  ;;  %v308_v8 = vsub.f32 %v246_v38, %v292_v3  ;;  %v311_v16 = vsub.f32 %v249_v42, %v295_v10 }
 0x13f   : > { %v313_v17 = vsub.f32 %v251_v44, %v297_v11  ;;  %v312_v28 = vsub.f32 %v250_v43, %v296_v21  ;;  %v315_v29 = vsub.f32 %v253_v49, %v299_v23  ;;  %v314_v36 = vsub.f32 %v252_v48, %v298_v31 }
 0x140   : > { %v320_v12 = vmul.f32 1.442695, %v310_v6  ;;  %v318_v14 = vmul.f32 1.442695, %v309_v7  ;;  %v316_v15 = vmul.f32 1.442695, %v308_v8 }
 0x141   : > { %v322_v20 = vmul.f32 1.442695, %v311_v16  ;;  %v326_v22 = vmul.f32 1.442695, %v313_v17  ;;  %v324_v30 = vmul.f32 1.442695, %v312_v28 }
 0x142   : > { %684 = vpow2.f32 %v320_v12  ;;  %v330_v32 = vmul.f32 1.442695, %v315_v29  ;;  %v328_v37 = vmul.f32 1.442695, %v314_v36 }
 0x143   : > { %686 = vpow2.f32 %v318_v14 }
 0x144   : > { %688 = vpow2.f32 %v316_v15 }
 0x145   : > { %690 = vpow2.f32 %v322_v20 }
 0x146   : > { %692 = vpow2.f32 %v326_v22 }
 0x147   : > { %694 = vpow2.f32 %v324_v30 }
 0x148   : > { %v983_v25 = vpop.eup %684  ;;  %696 = vpow2.f32 %v330_v32 }
 0x149   : > { %v687_v26 = vpop.eup %686  ;;  %347 = vperm.xlu1 %679, %v983_v25   ;;  %698 = vpow2.f32 %v328_v37 }
 0x14a   : > { %v689_v27 = vpop.eup %688  ;;  %344 = vperm.xlu2 %681, %v687_v26  }
 0x14b   : > { %341 = vperm.xlu0 %680, %v689_v27   ;;  %v691_v33 = vpop.eup %690 }
 0x14c   : > { %v693_v34 = vpop.eup %692 }
 0x14d   : > { %v695_v38 = vpop.eup %694 }
 0x14e   : > { %v697_v39 = vpop.eup %696 }
 0x14f   : > { %v699_v40 = vpop.eup %698 }
 0x151   : > { %350 = vperm.xlu1 %679, %v691_v33  }
 0x152   : > { %356 = vperm.xlu2 %681, %v693_v34  }
 0x159   : > { %353 = vperm.xlu1 %679, %v695_v38  }
 0x15a   : > { %362 = vperm.xlu2 %681, %v697_v39  }
 0x161   : > { %359 = vperm.xlu1 %679, %v699_v40  }
 0x1a4   : > { %v345_v42 = vpop.permute.xlu2 %344 }
 0x1a5   : > { %v365_v47 = vperm.slane %v345_v42, %v965_v35 }
 0x1ac   : > { %v357_v45 = vpop.permute.xlu2 %356 }
 0x1ad   : > { %v369_v57 = vperm.slane %v357_v45, %v965_v35 }
 0x1b4   : > { %v363_v55 = vpop.permute.xlu2 %362 }
 0x1b5   : > { %v371_v60 = vperm.slane %v363_v55, %v965_v35 }
 0x1bb   : > { %v348_v41 = vpop.permute.xlu1 %347 }
 0x1bc   : > { %v366_v48 = vperm.slane %v348_v41, %v965_v35 }
 0x1bd   : > { %v342_v44 = vpop.permute.xlu0 %341 }
 0x1be   : > { %v364_v46 = vperm.slane %v342_v44, %v965_v35 }
 0x1c0   : > { %v372_v50 = vsel %vm272_vm1, %v365_v47, %v364_v46 }
 0x1c1   : > { %v373_v53 = vsel %vm274_vm2, %v366_v48, %v372_v50 }
 0x1c3   : > { %v351_v43 = vpop.permute.xlu1 %350 }
 0x1c4   : > { %v367_v51 = vperm.slane %v351_v43, %v965_v35 }
 0x1c6   : > { %v374_v54 = vsel %vm276_vm3, %v367_v51, %v373_v53 }
 0x1cb   : > { %v354_v49 = vpop.permute.xlu1 %353 }
 0x1cc   : > { %v368_v52 = vperm.slane %v354_v49, %v965_v35 }
 0x1ce   : > { %v375_v56 = vsel %vm278_vm4, %v368_v52, %v374_v54 }
 0x1cf   : > { %v376_v61 = vsel %vm280_vm5, %v369_v57, %v375_v56 }
 0x1d3   : > { %v360_v58 = vpop.permute.xlu1 %359 }
 0x1d4   : > { %v370_v59 = vperm.slane %v360_v58, %v965_v35 }
 0x1d6   : > { %v377_v62 = vsel %vm282_vm6, %v370_v59, %v376_v61 }
 0x1d7   : > { %v378_v63 = vsel %vm284_vm7, %v371_v60, %v377_v62 }
 0x1d8   : > { %v380_v0 = vsel %vm287_vm8, %v378_v63, 0.0 }
 0x1d9   : > { %381 = vadd.xlane.f32.xlu1 %v380_v0 }
 0x24c   : > { %v382_v1 = vpop.xlane.xlu1 %381 }
 0x24d   : > { %700 = vrcp.f32 %v382_v1 }
 0x253   : > { %v701_v3 = vpop.eup %700 }
 0x254   : > { %v386_v6 = vperm.slane %v701_v3, 1  ;;  %v385_v7 = vperm.slane %v701_v3, 0  ;;  %v388_v11 = vperm.slane %v701_v3, 3  ;;  %v387_v35 = vperm.slane %v701_v3, 2 }
 0x255   : > { %v390_v15 = vperm.slane %v701_v3, 5  ;;  %v389_v16 = vperm.slane %v701_v3, 4  ;;  %v392_v21 = vperm.slane %v701_v3, 7  ;;  %v391_v22 = vperm.slane %v701_v3, 6 }
 0x256   : > { %v402_v8 = vmul.f32 %v687_v26, %v386_v6  ;;  %v401_v10 = vmul.f32 %v689_v27, %v385_v7  ;;  %v404_v12 = vmul.f32 %v691_v33, %v388_v11  ;;  %v403_v14 = vmul.f32 %v983_v25, %v387_v35 }
 0x257   : > { %v406_v17 = vmul.f32 %v693_v34, %v390_v15  ;;  %v405_v20 = vmul.f32 %v695_v38, %v389_v16  ;;  %v408_v23 = vmul.f32 %v697_v39, %v392_v21  ;;  %v407_v26 = vmul.f32 %v699_v40, %v391_v22 }
 0x258   : > { %416 = vperm.xlu2 %681, %v402_v8   ;;  %411 = vperm.xlu0 %680, %v401_v10  }
 0x260   : > { %426 = vperm.xlu2 %681, %v404_v12   ;;  %421 = vperm.xlu0 %680, %v403_v14  }
 0x268   : > { %436 = vperm.xlu2 %681, %v406_v17   ;;  %431 = vperm.xlu0 %680, %v405_v20  }
 0x270   : > { %446 = vperm.xlu2 %681, %v408_v23   ;;  %441 = vperm.xlu0 %680, %v407_v26  }
 0x2b2   : > { %v417_v27 = vpop.permute.xlu2 %416 }
 0x2b3   : > { %v450_v31 = vmul.f32 %v417_v27, %v938_v9 }
 0x2b5   : > { %v464_v33 = vsel %vm214_vm0, %v450_v31, 0.0 }
 0x2b6   : > { %v465_v38 = vrot.slane %v464_v33, 4 }
 0x2b8   : > { %v466_v45 = vadd.f32 %v465_v38, %v464_v33 }
 0x2ba   : > { %v427_v28 = vpop.permute.xlu2 %426  ;;  %v467_v51 = vrot.slane %v466_v45, 2 }
 0x2bb   : > { %v452_v34 = vmul.f32 %v427_v28, %v932_v5 }
 0x2bc   : > { %v468_v58 = vadd.f32 %v467_v51, %v466_v45 }
 0x2bd   : > { %v478_v41 = vsel %vm214_vm0, %v452_v34, 0.0 }
 0x2be   : > { %v479_v46 = vrot.slane %v478_v41, 4  ;;  %v469_v6 = vrot.slane %v468_v58, 1 }
 0x2c0   : > { %v480_v52 = vadd.f32 %v479_v46, %v478_v41  ;;  %v470_v17 = vadd.f32 %v469_v6, %v468_v58 }
 0x2c2   : > { %v437_v29 = vpop.permute.xlu2 %436  ;;  %v481_v59 = vrot.slane %v480_v52, 2 }
 0x2c3   : > { %v454_v42 = vmul.f32 %v437_v29, %v951_v18 }
 0x2c4   : > { %v482_v7 = vadd.f32 %v481_v59, %v480_v52 }
 0x2c5   : > { %v492_v5 = vsel %vm214_vm0, %v454_v42, 0.0 }
 0x2c6   : > { %v493_v53 = vrot.slane %v492_v5, 4  ;;  %v483_v20 = vrot.slane %v482_v7, 1 }
 0x2c8   : > { %v494_v60 = vadd.f32 %v493_v53, %v492_v5  ;;  %v484_v29 = vadd.f32 %v483_v20, %v482_v7 }
 0x2ca   : > { %v412_v30 = vpop.permute.xlu0 %411  ;;  %v447_v39 = vpop.permute.xlu2 %446  ;;  %v495_v8 = vrot.slane %v494_v60, 2 }
 0x2cb   : > { %v449_v25 = vmul.f32 %v412_v30, %v929_v4  ;;  %v456_v9 = vmul.f32 %v447_v39, %v961_v24 }
 0x2cc   : > { %v496_v21 = vadd.f32 %v495_v8, %v494_v60 }
 0x2cd   : > { %v457_v32 = vsel %vm214_vm0, %v449_v25, 0.0  ;;  %v506_v48 = vsel %vm214_vm0, %v456_v9, 0.0 }
 0x2ce   : > { %v458_v36 = vrot.slane %v457_v32, 4  ;;  %v507_v54 = vrot.slane %v506_v48, 4  ;;  %v497_v30 = vrot.slane %v496_v21, 1 }
 0x2d0   : > { %v459_v43 = vadd.f32 %v458_v36, %v457_v32  ;;  %v508_v62 = vadd.f32 %v507_v54, %v506_v48  ;;  %v498_v36 = vadd.f32 %v497_v30, %v496_v21 }
 0x2d2   : > { %v422_v37 = vpop.permute.xlu0 %421  ;;  %v460_v49 = vrot.slane %v459_v43, 2  ;;  %v509_v11 = vrot.slane %v508_v62, 2 }
 0x2d3   : > { %v451_v40 = vmul.f32 %v422_v37, %v923_v2 }
 0x2d4   : > { %v461_v55 = vadd.f32 %v460_v49, %v459_v43  ;;  %v510_v23 = vadd.f32 %v509_v11, %v508_v62 }
 0x2d5   : > { %v471_v4 = vsel %vm214_vm0, %v451_v40, 0.0 }
 0x2d6   : > { %v472_v44 = vrot.slane %v471_v4, 4  ;;  %v462_v63 = vrot.slane %v461_v55, 1  ;;  %v511_v31 = vrot.slane %v510_v23, 1 }
 0x2d8   : > { %v473_v47 = vadd.f32 %v472_v44, %v471_v4  ;;  %v463_v35 = vadd.f32 %v462_v63, %v461_v55  ;;  %v512_v38 = vadd.f32 %v511_v31, %v510_v23 }
 0x2da   : > { %v474_v50 = vrot.slane %v473_v47, 2  ;;  %v432_v2 = vpop.permute.xlu0 %431  ;;  %v521_v26 = vsel %vm272_vm1, %v470_v17, %v463_v35 }
 0x2db   : > { %v453_v18 = vmul.f32 %v432_v2, %v944_v13 }
 0x2dc   : > { %v475_v56 = vadd.f32 %v474_v50, %v473_v47 }
 0x2dd   : > { %v485_v24 = vsel %vm214_vm0, %v453_v18, 0.0 }
 0x2de   : > { %v486_v57 = vrot.slane %v485_v24, 4  ;;  %v476_v0 = vrot.slane %v475_v56, 1 }
 0x2e0   : > { %v487_v61 = vadd.f32 %v486_v57, %v485_v24  ;;  %v477_v14 = vadd.f32 %v476_v0, %v475_v56 }
 0x2e2   : > { %v488_v1 = vrot.slane %v487_v61, 2  ;;  %v442_v3 = vpop.permute.xlu0 %441  ;;  %v522_v27 = vsel %vm274_vm2, %v477_v14, %v521_v26 }
 0x2e3   : > { %v455_v13 = vmul.f32 %v442_v3, %v954_v19  ;;  %v523_v32 = vsel %vm276_vm3, %v484_v29, %v522_v27 }
 0x2e4   : > { %v489_v10 = vadd.f32 %v488_v1, %v487_v61 }
 0x2e5   : > { %v499_v12 = vsel %vm214_vm0, %v455_v13, 0.0 }
 0x2e6   : > { %v490_v15 = vrot.slane %v489_v10, 1  ;;  %v500_v16 = vrot.slane %v499_v12, 4 }
 0x2e8   : > { %v501_v22 = vadd.f32 %v500_v16, %v499_v12  ;;  %v491_v19 = vadd.f32 %v490_v15, %v489_v10 }
 0x2ea   : > { %v502_v28 = vrot.slane %v501_v22, 2  ;;  %v524_v33 = vsel %vm278_vm4, %v491_v19, %v523_v32 }
 0x2eb   : > { %v525_v39 = vsel %vm280_vm5, %v498_v36, %v524_v33 }
 0x2ec   : > { %v503_v25 = vadd.f32 %v502_v28, %v501_v22 }
 0x2ee   : > { %v504_v34 = vrot.slane %v503_v25, 1 }
 0x2f0   : > { %v505_v37 = vadd.f32 %v504_v34, %v503_v25 }
 0x2f2   : > { %v526_v40 = vsel %vm282_vm6, %v505_v37, %v525_v39 }
 0x2f3   : > { %v527_v41 = vsel %vm284_vm7, %v512_v38, %v526_v40 }
 0x2f4   : > { %529 = vst.msk [vmem:[%s192_s2] sm:$0xff] %vm214_vm0, %v527_v41 }
 0x2f5   : > { %759 = shalt.err (!%p756_p4)
}
 0x2f6   : > { %632 = dma.vmem_to_hbm [thread:$0]  (%p876_p11), %s544_s12, 128, %s546_s13, %s531_s18  }
 0x2f7 PF: > { %s557_s29 = sand.u32 1, %s786_s14   ;;  %p1070_p7 = scmp.ge.s32.totalorder %s798_s17, 2 }
 0x2f8   : > { %s558_s5 = scalar_lea.sflag [#allocation5], %s557_s29 }
 0x2f9   : > { %p639_p5 = pnand %p1070_p7, %p880_p12 }
 0x2fb   : > { %p640_p8 = pneg %p639_p5 }
 0x2fd   : > { %781 = dma.done.wait (%p640_p8), %s558_s5, 128  }
 0x2fe   : > { %783 = vsyncadd (%p640_p8), %s558_s5, 4294967168  ;;  %p18_p10 = scmp.ge.s32.totalorder %s851_s19, 4   ;;  %s1071_s14 = smov %s790_s15 }
 0x2ff   : > { %s1072_s15 = smov %s794_s16  ;;  %s1073_s16 = smov %s863_s22 }
 0x300   : > { %s1074_s17 = smov %s851_s19  ;;  %20 = sbr.rel (!%p18_p10) target bundleno = 8 (0x8), region = 77 }
 0x305   :  { %564 = vsyncpa [#allocation4], 1 }
 0x306   :  { %566 = vsyncpa [#allocation4 + $0x1], 1 }
 0x307   :  { %567 = vsyncpa [#allocation5], 1 }
 0x308   :  { %569 = vsyncpa [#allocation5 + $0x1], 1 }

</bundles_post_ra>
